<compile_context>
chip_gen: v5e
topology: v5e:2x2
jax: 0.10.0
libtpu: 0.0.40
codegen_flags: <defaults>
</compile_context>

<pallas_src>
import functools

import jax
import jax.numpy as jnp
from jax.experimental import pallas as pl
from jax.experimental.pallas import tpu as pltpu

# ----------------------------- model hyper-parameters -----------------------------
B = 2                 # batch
IMG_H = IMG_W = 7     # minigrid image 7x7x3
IMG_C = 3
CONV_K = 2            # nn.Conv2d(3, 4, (2, 2))
CONV_OUT = 4
POOL_H = POOL_W = 3   # 6x6 conv output -> maxpool(2,2) -> 3x3
N_POOL = POOL_H * POOL_W                       # 9 pooled positions
PATCH = IMG_C * CONV_K * CONV_K                # 12 = im2col patch width (c, kh, kw)
FLAT_CNN = CONV_OUT * N_POOL                   # 36 (matches Linear(36 + ...))
VOCAB = 16            # len(vocab)
MAX_LEN = 8           # max_len
EMBED = 24            # nn.Embedding(len(vocab), 24)
LSTM_H = 12           # nn.LSTM(24, 12, batch_first=True)
LIN_IN = FLAT_CNN + MAX_LEN * LSTM_H           # 132
LIN_OUT = 24          # nn.Linear(132, 24)
N_ACTIONS = 7         # minigrid action_space.n

_VMEM = functools.partial(pl.BlockSpec, memory_space=pltpu.MemorySpace.VMEM)

# ------------------- single-DMA weight blob layout (static offsets) -----------------
# (name, rows, cols); every segment starts at an 8-aligned row, column 0.
_SEGMENTS = (
    ('wbig',  N_POOL * PATCH,    FLAT_CNN),      # (108, 36) block-diag conv weight
    ('bconv', 1,                 FLAT_CNN),      # (1, 36)   conv bias, (c, pp) order
    ('embp',  VOCAB,             4 * LSTM_H),    # (16, 48)  emb @ W_ih.T (g cols x2)
    ('blstm', 1,                 4 * LSTM_H),    # (1, 48)   b_ih + b_hh (g cols x2)
    ('whh',   LSTM_H,            4 * LSTM_H),    # (12, 48)  W_hh.T      (g cols x2)
    ('w1c',   FLAT_CNN,          LIN_OUT),       # (36, 24)  Linear1, CNN part
    ('w1l',   MAX_LEN * LSTM_H,  LIN_OUT),       # (96, 24)  Linear1, LSTM part
    ('b1',    1,                 LIN_OUT),       # (1, 24)
    ('w2',    LIN_OUT,           N_ACTIONS),     # (24, 7)
    ('b2',    1,                 N_ACTIONS),     # (1, 7)
)


def _layout():
    offs, r = {}, 0
    for name, nr, nc in _SEGMENTS:
        offs[name] = (r, nr, nc)
        r += -(-nr // 8) * 8                      # 8-row alignment per segment
    return offs, r


_OFFS, _BLOB_ROWS = _layout()                     # 336 rows
_BLOB_COLS = 128                                  # one lane tile wide


# ----------------------------------- fused kernel -----------------------------------
def actor_fused_kernel(blob_ref, xcnn_ref, ids_ref, out_ref, hbuf_ref):
    f32 = jnp.float32
    H = LSTM_H

    def seg(name):                                # static slice of the weight blob
        r0, nr, nc = _OFFS[name]
        return blob_ref[r0:r0 + nr, 0:nc]

    # ---- CNN: conv(2x2) + bias + ReLU + 2x2 max-pool, a single matmul ----
    # xcnn: (4B, 108) patches, rows = (quadrant, batch), cols = (pooled_pos, patch_k)
    # wbig: (108, 36) block-diagonal conv weight, cols already in NCHW flatten order
    y = jnp.dot(xcnn_ref[...], seg('wbig'), preferred_element_type=f32)     # (4B, 36)
    y = jnp.maximum(y + seg('bconv'), 0.0)                                  # bias + ReLU
    pooled = jnp.maximum(                                                   # max over the
        jnp.maximum(y[0 * B:1 * B, :], y[1 * B:2 * B, :]),                  # 4 quadrants
        jnp.maximum(y[2 * B:3 * B, :], y[3 * B:4 * B, :]))                  # (B, 36)

    # ---- language branch: one-hot pick of (emb @ W_ih.T), whole sequence at once ----
    iota_v = jax.lax.broadcasted_iota(jnp.int32, (MAX_LEN * B, VOCAB), 1)
    onehot = (iota_v == ids_ref[...]).astype(f32)                           # (T*B, V)
    pre = (jnp.dot(onehot, seg('embp'), preferred_element_type=f32)
           + seg('blstm'))                                                  # (T*B, 4H)

    # ---- LSTM recurrence: lane-dense (B, 4H) gates, one MXU push / step ----
    # The g-gate columns of embp/blstm/whh are pre-scaled by 2, so one sigmoid
    # over the whole tile + (2*s - 1) yields tanh(g) exactly.
    # TODO(synk): on v5e/v6e, evaluate a VPU broadcast-FMA form of the (2,12)x(12,48)
    # recurrent matmul to keep the MXU round trip off the serial chain entirely.
    whh_t = seg('whh')                                                      # (12, 48)
    h = jnp.zeros((B, H), f32)
    c = jnp.zeros((B, H), f32)
    for t in range(MAX_LEN):                       # static unroll, T = 8
        gates = pre[t * B:(t + 1) * B, :] + jnp.dot(
            h, whh_t, preferred_element_type=f32)                           # (B, 4H)
        s = jax.nn.sigmoid(gates)                  # single EUP push on one vreg
        i_g = s[:, 0 * H:1 * H]
        f_g = s[:, 1 * H:2 * H]
        g_g = 2.0 * s[:, 2 * H:3 * H] - 1.0        # tanh(g) = 2*sigmoid(2g) - 1
        o_g = s[:, 3 * H:4 * H]
        c = f_g * c + i_g * g_g
        h = o_g * jnp.tanh(c)
        hbuf_ref[:, t * H:(t + 1) * H] = h         # stash h_t; head matmul after loop

    # ---- head: Linear(132->24) + ReLU + Linear(24->7) + softmax over actions ----
    h1 = jnp.maximum(
        jnp.dot(pooled, seg('w1c'), preferred_element_type=f32)
        + jnp.dot(hbuf_ref[...], seg('w1l'), preferred_element_type=f32)
        + seg('b1'), 0.0)                                                   # (B, 24)
    logits = jnp.dot(h1, seg('w2'), preferred_element_type=f32) + seg('b2')  # (B, A)
    m = jnp.max(logits, axis=-1, keepdims=True)
    e = jnp.exp(logits - m)
    out_ref[...] = e / jnp.sum(e, axis=-1, keepdims=True)


def actor_pallas(blob, x_cnn, ids_col):
    return pl.pallas_call(
        actor_fused_kernel,
        out_shape=jax.ShapeDtypeStruct((B, N_ACTIONS), jnp.float32),
        in_specs=[_VMEM(), _VMEM(), _VMEM()],
        out_specs=_VMEM(),
        scratch_shapes=[pltpu.VMEM((B, MAX_LEN * LSTM_H), jnp.float32)],
    )(blob, x_cnn, ids_col)


# ------------------------------ parameter re-layout (once) --------------------------
def prepare_params(p):
    """One-time weight re-layout + packing into a single (336,128) f32 blob."""
    f32 = jnp.float32
    H = LSTM_H

    # conv weight flattened PyTorch-style: (c_out, c_in*kh*kw)
    w_flat = p['conv_w'].reshape(CONV_OUT, PATCH)                         # (4, 12)
    eye9 = jnp.eye(N_POOL, dtype=f32)
    # block-diag conv weight: rows (pooled_pos, patch_k), cols (c, pooled_pos)
    wbig = (eye9[:, None, None, :] * w_flat.T[None, :, :, None]).reshape(
        N_POOL * PATCH, CONV_OUT * N_POOL)                                # (108, 36)
    bconv = jnp.repeat(p['conv_b'], N_POOL).reshape(1, FLAT_CNN)          # (1, 36)

    # scale the g-gate (index 2) columns by 2 for the fused tanh-via-sigmoid trick
    gscale = jnp.ones((4 * H,), f32).at[2 * H:3 * H].set(2.0)
    embp = (p['emb'] @ p['w_ih'].T) * gscale[None, :]                     # (16, 48)
    blstm = ((p['b_ih'] + p['b_hh']) * gscale).reshape(1, 4 * H)          # (1, 48)
    whh_t = p['w_hh'].T * gscale[None, :]                                 # (12, 48)

    w1c = p['w1'][:, :FLAT_CNN].T                                         # (36, 24)
    w1l = p['w1'][:, FLAT_CNN:].T                                         # (96, 24)
    b1 = p['b1'].reshape(1, LIN_OUT)
    w2 = p['w2'].T                                                        # (24, 7)
    b2 = p['b2'].reshape(1, N_ACTIONS)

    segs = dict(wbig=wbig, bconv=bconv, embp=embp, blstm=blstm, whh=whh_t,
                w1c=w1c, w1l=w1l, b1=b1, w2=w2, b2=b2)
    blob = jnp.zeros((_BLOB_ROWS, _BLOB_COLS), f32)
    for name, (r0, nr, nc) in _OFFS.items():
        blob = blob.at[r0:r0 + nr, 0:nc].set(segs[name].astype(f32))
    return {'blob': blob}


# ---------------------------------- forward pass ------------------------------------
@jax.jit
def actor_forward(vis, ids, prep):
    # im2col patches with feature order (c, kh, kw): 4 shifted slices
    cols = [vis[:, di:di + IMG_H - 1, dj:dj + IMG_W - 1, :]
            for di in range(CONV_K) for dj in range(CONV_K)]
    patches = jnp.stack(cols, axis=-1).reshape(B, IMG_H - 1, IMG_W - 1, PATCH)
    # group by pooled position / quadrant: rows (quad, b), cols (pooled_pos, patch_k)
    pr = patches.reshape(B, POOL_H, 2, POOL_W, 2, PATCH)      # (b, ph, qi, pw, qj, k)
    x_cnn = jnp.transpose(pr, (2, 4, 0, 1, 3, 5)).reshape(4 * B, N_POOL * PATCH)

    # token ids as a single column, rows ordered (t, b)
    ids_col = jnp.transpose(ids.astype(jnp.int32)).reshape(MAX_LEN * B, 1)

    # NOTE(v7x): at B=2 / one instance, a single grid point is correct; when the
    # A2C loop evaluates many envs, add a leading "parallel" grid axis over
    # instances so the second TensorCore is used.
    return actor_pallas(prep['blob'], x_cnn, ids_col)                     # (B, A)


# --------------------------------- pure-JAX reference -------------------------------
def actor_forward_reference(vis, ids, p):
    w_hwio = jnp.transpose(p['conv_w'], (2, 3, 1, 0))
    conv = jax.lax.conv_general_dilated(
        vis, w_hwio, (1, 1), 'VALID',
        dimension_numbers=('NHWC', 'HWIO', 'NHWC')) + p['conv_b']
    conv = jnp.maximum(conv, 0.0)
    pooled = jnp.max(conv.reshape(B, 3, 2, 3, 2, CONV_OUT), axis=(2, 4))
    flat = jnp.transpose(pooled, (0, 3, 1, 2)).reshape(B, -1)

    x = p['emb'][ids]
    h = jnp.zeros((B, LSTM_H), jnp.float32)
    c = jnp.zeros((B, LSTM_H), jnp.float32)
    hs = []
    for t in range(MAX_LEN):
        g = x[:, t, :] @ p['w_ih'].T + p['b_ih'] + h @ p['w_hh'].T + p['b_hh']
        i_g = jax.nn.sigmoid(g[:, :LSTM_H])
        f_g = jax.nn.sigmoid(g[:, LSTM_H:2 * LSTM_H])
        g_g = jnp.tanh(g[:, 2 * LSTM_H:3 * LSTM_H])
        o_g = jax.nn.sigmoid(g[:, 3 * LSTM_H:])
        c = f_g * c + i_g * g_g
        h = o_g * jnp.tanh(c)
        hs.append(h)
    lstm_flat = jnp.stack(hs, axis=1).reshape(B, -1)

    lin_in = jnp.concatenate([flat, lstm_flat], axis=1)
    h1 = jnp.maximum(lin_in @ p['w1'].T + p['b1'], 0.0)
    logits = h1 @ p['w2'].T + p['b2']
    return jax.nn.softmax(logits, axis=1)


# ------------------------------------- main -----------------------------------------
if __name__ == "__main__":
    key = jax.random.PRNGKey(0)
    ks = jax.random.split(key, 14)

    params = {
        'conv_w': jax.random.normal(ks[0], (CONV_OUT, IMG_C, 2, 2), jnp.float32) * 0.2,
        'conv_b': jax.random.normal(ks[1], (CONV_OUT,), jnp.float32) * 0.1,
        'emb':    jax.random.normal(ks[2], (VOCAB, EMBED), jnp.float32) * 0.2,
        'w_ih':   jax.random.normal(ks[3], (4 * LSTM_H, EMBED), jnp.float32) * 0.2,
        'w_hh':   jax.random.normal(ks[4], (4 * LSTM_H, LSTM_H), jnp.float32) * 0.2,
        'b_ih':   jax.random.normal(ks[5], (4 * LSTM_H,), jnp.float32) * 0.1,
        'b_hh':   jax.random.normal(ks[6], (4 * LSTM_H,), jnp.float32) * 0.1,
        'w1':     jax.random.normal(ks[7], (LIN_OUT, LIN_IN), jnp.float32) * 0.1,
        'b1':     jax.random.normal(ks[8], (LIN_OUT,), jnp.float32) * 0.1,
        'w2':     jax.random.normal(ks[9], (N_ACTIONS, LIN_OUT), jnp.float32) * 0.1,
        'b2':     jax.random.normal(ks[10], (N_ACTIONS,), jnp.float32) * 0.1,
    }

    vis = jax.random.uniform(ks[11], (B, IMG_H, IMG_W, IMG_C), jnp.float32)
    ids = jax.random.randint(ks[12], (B, MAX_LEN), 0, VOCAB, dtype=jnp.int32)

    prep = prepare_params(params)

    out = jax.block_until_ready(actor_forward(vis, ids, prep))
    ref = jax.block_until_ready(actor_forward_reference(vis, ids, params))

    assert out.shape == (B, N_ACTIONS)
    assert jnp.allclose(jnp.sum(out, axis=1), 1.0, atol=1e-4)
    assert jnp.allclose(out, ref, atol=5e-3, rtol=5e-3), (out, ref)

    print("KERNEL_OK")
</pallas_src>

<mosaic_0001>
module attributes {stable_mosaic.version = 11 : i64} {
  func.func @actor_fused_kernel(%arg0: memref<336x128xf32, #tpu.memory_space<vmem>>, %arg1: memref<8x108xf32, #tpu.memory_space<vmem>>, %arg2: memref<16x1xi32, #tpu.memory_space<vmem>>, %arg3: memref<2x7xf32, #tpu.memory_space<vmem>>, %arg4: memref<2x96xf32, #tpu.memory_space<vmem>>) attributes {dimension_semantics = [], scalar_prefetch = 0 : i64, scratch_operands = 1 : i64, tpu.core_type = #tpu.core_type<tc>} {
    %c0 = arith.constant 0 : index
    %c0_0 = arith.constant 0 : index
    %0 = vector.load %arg1[%c0, %c0_0] : memref<8x108xf32, #tpu.memory_space<vmem>>, vector<8x108xf32>
    %c0_1 = arith.constant 0 : index
    %c0_2 = arith.constant 0 : index
    %1 = vector.load %arg0[%c0_1, %c0_2] : memref<336x128xf32, #tpu.memory_space<vmem>>, vector<108x36xf32>
    %cst = arith.constant dense<0.000000e+00> : vector<8x36xf32>
    %2 = tpu.matmul %0, %1, %cst {dimension_numbers = #tpu.dot_dimension_numbers<[1], [0], [0], [1], [0, 0, 1, 1], [], []>} : vector<8x108xf32>, vector<108x36xf32>, vector<8x36xf32> -> vector<8x36xf32>
    %c112 = arith.constant 112 : index
    %c0_3 = arith.constant 0 : index
    %3 = vector.load %arg0[%c112, %c0_3] : memref<336x128xf32, #tpu.memory_space<vmem>>, vector<1x36xf32>
    %4 = vector.broadcast %3 : vector<1x36xf32> to vector<8x36xf32>
    %5 = arith.addf %2, %4 : vector<8x36xf32>
    %cst_4 = arith.constant 0.000000e+00 : f32
    %6 = vector.broadcast %cst_4 : f32 to vector<8x36xf32>
    %7 = arith.maximumf %5, %6 : vector<8x36xf32>
    %8 = vector.extract_strided_slice %7 {offsets = [0, 0], sizes = [2, 36], strides = [1, 1]} : vector<8x36xf32> to vector<2x36xf32>
    %9 = vector.extract_strided_slice %7 {offsets = [2, 0], sizes = [2, 36], strides = [1, 1]} : vector<8x36xf32> to vector<2x36xf32>
    %10 = arith.maximumf %8, %9 : vector<2x36xf32>
    %11 = vector.extract_strided_slice %7 {offsets = [4, 0], sizes = [2, 36], strides = [1, 1]} : vector<8x36xf32> to vector<2x36xf32>
    %12 = vector.extract_strided_slice %7 {offsets = [6, 0], sizes = [2, 36], strides = [1, 1]} : vector<8x36xf32> to vector<2x36xf32>
    %13 = arith.maximumf %11, %12 : vector<2x36xf32>
    %14 = arith.maximumf %10, %13 : vector<2x36xf32>
    %15 = tpu.iota {dimensions = array<i32: 1>} : vector<16x16xi32>
    %c0_5 = arith.constant 0 : index
    %c0_6 = arith.constant 0 : index
    %16 = vector.load %arg2[%c0_5, %c0_6] : memref<16x1xi32, #tpu.memory_space<vmem>>, vector<16x1xi32>
    %17 = vector.broadcast %16 : vector<16x1xi32> to vector<16x16xi32>
    %18 = arith.cmpi eq, %15, %17 : vector<16x16xi32>
    %19 = arith.extui %18 : vector<16x16xi1> to vector<16x16xi32>
    %20 = arith.sitofp %19 : vector<16x16xi32> to vector<16x16xf32>
    %c120 = arith.constant 120 : index
    %c0_7 = arith.constant 0 : index
    %21 = vector.load %arg0[%c120, %c0_7] : memref<336x128xf32, #tpu.memory_space<vmem>>, vector<16x48xf32>
    %cst_8 = arith.constant dense<0.000000e+00> : vector<16x48xf32>
    %22 = tpu.matmul %20, %21, %cst_8 {dimension_numbers = #tpu.dot_dimension_numbers<[1], [0], [0], [1], [0, 0, 1, 1], [], []>} : vector<16x16xf32>, vector<16x48xf32>, vector<16x48xf32> -> vector<16x48xf32>
    %c136 = arith.constant 136 : index
    %c0_9 = arith.constant 0 : index
    %23 = vector.load %arg0[%c136, %c0_9] : memref<336x128xf32, #tpu.memory_space<vmem>>, vector<1x48xf32>
    %24 = vector.broadcast %23 : vector<1x48xf32> to vector<16x48xf32>
    %25 = arith.addf %22, %24 : vector<16x48xf32>
    %c144 = arith.constant 144 : index
    %c0_10 = arith.constant 0 : index
    %26 = vector.load %arg0[%c144, %c0_10] : memref<336x128xf32, #tpu.memory_space<vmem>>, vector<12x48xf32>
    %cst_11 = arith.constant 0.000000e+00 : f32
    %27 = vector.broadcast %cst_11 : f32 to vector<2x12xf32>
    %cst_12 = arith.constant 0.000000e+00 : f32
    %28 = vector.broadcast %cst_12 : f32 to vector<2x12xf32>
    %29 = vector.extract_strided_slice %25 {offsets = [0, 0], sizes = [2, 48], strides = [1, 1]} : vector<16x48xf32> to vector<2x48xf32>
    %cst_13 = arith.constant dense<0.000000e+00> : vector<2x48xf32>
    %30 = tpu.matmul %27, %26, %cst_13 {dimension_numbers = #tpu.dot_dimension_numbers<[1], [0], [0], [1], [0, 0, 1, 1], [], []>} : vector<2x12xf32>, vector<12x48xf32>, vector<2x48xf32> -> vector<2x48xf32>
    %31 = arith.addf %29, %30 : vector<2x48xf32>
    %32 = arith.negf %31 : vector<2x48xf32>
    %33 = math.exp %32 : vector<2x48xf32>
    %cst_14 = arith.constant 1.000000e+00 : f32
    %34 = vector.broadcast %cst_14 : f32 to vector<2x48xf32>
    %35 = arith.addf %34, %33 : vector<2x48xf32>
    %36 = arith.divf %34, %35 : vector<2x48xf32>
    %37 = vector.extract_strided_slice %36 {offsets = [0, 0], sizes = [2, 12], strides = [1, 1]} : vector<2x48xf32> to vector<2x12xf32>
    %38 = vector.extract_strided_slice %36 {offsets = [0, 12], sizes = [2, 12], strides = [1, 1]} : vector<2x48xf32> to vector<2x12xf32>
    %39 = vector.extract_strided_slice %36 {offsets = [0, 24], sizes = [2, 12], strides = [1, 1]} : vector<2x48xf32> to vector<2x12xf32>
    %cst_15 = arith.constant 2.000000e+00 : f32
    %40 = vector.broadcast %cst_15 : f32 to vector<2x12xf32>
    %41 = arith.mulf %40, %39 : vector<2x12xf32>
    %cst_16 = arith.constant 1.000000e+00 : f32
    %42 = vector.broadcast %cst_16 : f32 to vector<2x12xf32>
    %43 = arith.subf %41, %42 : vector<2x12xf32>
    %44 = vector.extract_strided_slice %36 {offsets = [0, 36], sizes = [2, 12], strides = [1, 1]} : vector<2x48xf32> to vector<2x12xf32>
    %45 = arith.mulf %38, %28 : vector<2x12xf32>
    %46 = arith.mulf %37, %43 : vector<2x12xf32>
    %47 = arith.addf %45, %46 : vector<2x12xf32>
    %48 = math.tanh %47 : vector<2x12xf32>
    %49 = arith.mulf %44, %48 : vector<2x12xf32>
    %c0_17 = arith.constant 0 : index
    %c0_18 = arith.constant 0 : index
    %50 = vector.load %arg4[%c0_17, %c0_18] : memref<2x96xf32, #tpu.memory_space<vmem>>, vector<2x12xf32>
    tpu.vector_store %arg4[%c0_17, %c0_18], %49 {strides = array<i32>} : memref<2x96xf32, #tpu.memory_space<vmem>>, vector<2x12xf32>,
    %51 = vector.extract_strided_slice %25 {offsets = [2, 0], sizes = [2, 48], strides = [1, 1]} : vector<16x48xf32> to vector<2x48xf32>
    %cst_19 = arith.constant dense<0.000000e+00> : vector<2x48xf32>
    %52 = tpu.matmul %49, %26, %cst_19 {dimension_numbers = #tpu.dot_dimension_numbers<[1], [0], [0], [1], [0, 0, 1, 1], [], []>} : vector<2x12xf32>, vector<12x48xf32>, vector<2x48xf32> -> vector<2x48xf32>
    %53 = arith.addf %51, %52 : vector<2x48xf32>
    %54 = arith.negf %53 : vector<2x48xf32>
    %55 = math.exp %54 : vector<2x48xf32>
    %cst_20 = arith.constant 1.000000e+00 : f32
    %56 = vector.broadcast %cst_20 : f32 to vector<2x48xf32>
    %57 = arith.addf %56, %55 : vector<2x48xf32>
    %58 = arith.divf %56, %57 : vector<2x48xf32>
    %59 = vector.extract_strided_slice %58 {offsets = [0, 0], sizes = [2, 12], strides = [1, 1]} : vector<2x48xf32> to vector<2x12xf32>
    %60 = vector.extract_strided_slice %58 {offsets = [0, 12], sizes = [2, 12], strides = [1, 1]} : vector<2x48xf32> to vector<2x12xf32>
    %61 = vector.extract_strided_slice %58 {offsets = [0, 24], sizes = [2, 12], strides = [1, 1]} : vector<2x48xf32> to vector<2x12xf32>
    %cst_21 = arith.constant 2.000000e+00 : f32
    %62 = vector.broadcast %cst_21 : f32 to vector<2x12xf32>
    %63 = arith.mulf %62, %61 : vector<2x12xf32>
    %cst_22 = arith.constant 1.000000e+00 : f32
    %64 = vector.broadcast %cst_22 : f32 to vector<2x12xf32>
    %65 = arith.subf %63, %64 : vector<2x12xf32>
    %66 = vector.extract_strided_slice %58 {offsets = [0, 36], sizes = [2, 12], strides = [1, 1]} : vector<2x48xf32> to vector<2x12xf32>
    %67 = arith.mulf %60, %47 : vector<2x12xf32>
    %68 = arith.mulf %59, %65 : vector<2x12xf32>
    %69 = arith.addf %67, %68 : vector<2x12xf32>
    %70 = math.tanh %69 : vector<2x12xf32>
    %71 = arith.mulf %66, %70 : vector<2x12xf32>
    %c0_23 = arith.constant 0 : index
    %c12 = arith.constant 12 : index
    %72 = vector.load %arg4[%c0_23, %c12] : memref<2x96xf32, #tpu.memory_space<vmem>>, vector<2x12xf32>
    tpu.vector_store %arg4[%c0_23, %c12], %71 {strides = array<i32>} : memref<2x96xf32, #tpu.memory_space<vmem>>, vector<2x12xf32>,
    %73 = vector.extract_strided_slice %25 {offsets = [4, 0], sizes = [2, 48], strides = [1, 1]} : vector<16x48xf32> to vector<2x48xf32>
    %cst_24 = arith.constant dense<0.000000e+00> : vector<2x48xf32>
    %74 = tpu.matmul %71, %26, %cst_24 {dimension_numbers = #tpu.dot_dimension_numbers<[1], [0], [0], [1], [0, 0, 1, 1], [], []>} : vector<2x12xf32>, vector<12x48xf32>, vector<2x48xf32> -> vector<2x48xf32>
    %75 = arith.addf %73, %74 : vector<2x48xf32>
    %76 = arith.negf %75 : vector<2x48xf32>
    %77 = math.exp %76 : vector<2x48xf32>
    %cst_25 = arith.constant 1.000000e+00 : f32
    %78 = vector.broadcast %cst_25 : f32 to vector<2x48xf32>
    %79 = arith.addf %78, %77 : vector<2x48xf32>
    %80 = arith.divf %78, %79 : vector<2x48xf32>
    %81 = vector.extract_strided_slice %80 {offsets = [0, 0], sizes = [2, 12], strides = [1, 1]} : vector<2x48xf32> to vector<2x12xf32>
    %82 = vector.extract_strided_slice %80 {offsets = [0, 12], sizes = [2, 12], strides = [1, 1]} : vector<2x48xf32> to vector<2x12xf32>
    %83 = vector.extract_strided_slice %80 {offsets = [0, 24], sizes = [2, 12], strides = [1, 1]} : vector<2x48xf32> to vector<2x12xf32>
    %cst_26 = arith.constant 2.000000e+00 : f32
    %84 = vector.broadcast %cst_26 : f32 to vector<2x12xf32>
    %85 = arith.mulf %84, %83 : vector<2x12xf32>
    %cst_27 = arith.constant 1.000000e+00 : f32
    %86 = vector.broadcast %cst_27 : f32 to vector<2x12xf32>
    %87 = arith.subf %85, %86 : vector<2x12xf32>
    %88 = vector.extract_strided_slice %80 {offsets = [0, 36], sizes = [2, 12], strides = [1, 1]} : vector<2x48xf32> to vector<2x12xf32>
    %89 = arith.mulf %82, %69 : vector<2x12xf32>
    %90 = arith.mulf %81, %87 : vector<2x12xf32>
    %91 = arith.addf %89, %90 : vector<2x12xf32>
    %92 = math.tanh %91 : vector<2x12xf32>
    %93 = arith.mulf %88, %92 : vector<2x12xf32>
    %c0_28 = arith.constant 0 : index
    %c24 = arith.constant 24 : index
    %94 = vector.load %arg4[%c0_28, %c24] : memref<2x96xf32, #tpu.memory_space<vmem>>, vector<2x12xf32>
    tpu.vector_store %arg4[%c0_28, %c24], %93 {strides = array<i32>} : memref<2x96xf32, #tpu.memory_space<vmem>>, vector<2x12xf32>,
    %95 = vector.extract_strided_slice %25 {offsets = [6, 0], sizes = [2, 48], strides = [1, 1]} : vector<16x48xf32> to vector<2x48xf32>
    %cst_29 = arith.constant dense<0.000000e+00> : vector<2x48xf32>
    %96 = tpu.matmul %93, %26, %cst_29 {dimension_numbers = #tpu.dot_dimension_numbers<[1], [0], [0], [1], [0, 0, 1, 1], [], []>} : vector<2x12xf32>, vector<12x48xf32>, vector<2x48xf32> -> vector<2x48xf32>
    %97 = arith.addf %95, %96 : vector<2x48xf32>
    %98 = arith.negf %97 : vector<2x48xf32>
    %99 = math.exp %98 : vector<2x48xf32>
    %cst_30 = arith.constant 1.000000e+00 : f32
    %100 = vector.broadcast %cst_30 : f32 to vector<2x48xf32>
    %101 = arith.addf %100, %99 : vector<2x48xf32>
    %102 = arith.divf %100, %101 : vector<2x48xf32>
    %103 = vector.extract_strided_slice %102 {offsets = [0, 0], sizes = [2, 12], strides = [1, 1]} : vector<2x48xf32> to vector<2x12xf32>
    %104 = vector.extract_strided_slice %102 {offsets = [0, 12], sizes = [2, 12], strides = [1, 1]} : vector<2x48xf32> to vector<2x12xf32>
    %105 = vector.extract_strided_slice %102 {offsets = [0, 24], sizes = [2, 12], strides = [1, 1]} : vector<2x48xf32> to vector<2x12xf32>
    %cst_31 = arith.constant 2.000000e+00 : f32
    %106 = vector.broadcast %cst_31 : f32 to vector<2x12xf32>
    %107 = arith.mulf %106, %105 : vector<2x12xf32>
    %cst_32 = arith.constant 1.000000e+00 : f32
    %108 = vector.broadcast %cst_32 : f32 to vector<2x12xf32>
    %109 = arith.subf %107, %108 : vector<2x12xf32>
    %110 = vector.extract_strided_slice %102 {offsets = [0, 36], sizes = [2, 12], strides = [1, 1]} : vector<2x48xf32> to vector<2x12xf32>
    %111 = arith.mulf %104, %91 : vector<2x12xf32>
    %112 = arith.mulf %103, %109 : vector<2x12xf32>
    %113 = arith.addf %111, %112 : vector<2x12xf32>
    %114 = math.tanh %113 : vector<2x12xf32>
    %115 = arith.mulf %110, %114 : vector<2x12xf32>
    %c0_33 = arith.constant 0 : index
    %c36 = arith.constant 36 : index
    %116 = vector.load %arg4[%c0_33, %c36] : memref<2x96xf32, #tpu.memory_space<vmem>>, vector<2x12xf32>
    tpu.vector_store %arg4[%c0_33, %c36], %115 {strides = array<i32>} : memref<2x96xf32, #tpu.memory_space<vmem>>, vector<2x12xf32>,
    %117 = vector.extract_strided_slice %25 {offsets = [8, 0], sizes = [2, 48], strides = [1, 1]} : vector<16x48xf32> to vector<2x48xf32>
    %cst_34 = arith.constant dense<0.000000e+00> : vector<2x48xf32>
    %118 = tpu.matmul %115, %26, %cst_34 {dimension_numbers = #tpu.dot_dimension_numbers<[1], [0], [0], [1], [0, 0, 1, 1], [], []>} : vector<2x12xf32>, vector<12x48xf32>, vector<2x48xf32> -> vector<2x48xf32>
    %119 = arith.addf %117, %118 : vector<2x48xf32>
    %120 = arith.negf %119 : vector<2x48xf32>
    %121 = math.exp %120 : vector<2x48xf32>
    %cst_35 = arith.constant 1.000000e+00 : f32
    %122 = vector.broadcast %cst_35 : f32 to vector<2x48xf32>
    %123 = arith.addf %122, %121 : vector<2x48xf32>
    %124 = arith.divf %122, %123 : vector<2x48xf32>
    %125 = vector.extract_strided_slice %124 {offsets = [0, 0], sizes = [2, 12], strides = [1, 1]} : vector<2x48xf32> to vector<2x12xf32>
    %126 = vector.extract_strided_slice %124 {offsets = [0, 12], sizes = [2, 12], strides = [1, 1]} : vector<2x48xf32> to vector<2x12xf32>
    %127 = vector.extract_strided_slice %124 {offsets = [0, 24], sizes = [2, 12], strides = [1, 1]} : vector<2x48xf32> to vector<2x12xf32>
    %cst_36 = arith.constant 2.000000e+00 : f32
    %128 = vector.broadcast %cst_36 : f32 to vector<2x12xf32>
    %129 = arith.mulf %128, %127 : vector<2x12xf32>
    %cst_37 = arith.constant 1.000000e+00 : f32
    %130 = vector.broadcast %cst_37 : f32 to vector<2x12xf32>
    %131 = arith.subf %129, %130 : vector<2x12xf32>
    %132 = vector.extract_strided_slice %124 {offsets = [0, 36], sizes = [2, 12], strides = [1, 1]} : vector<2x48xf32> to vector<2x12xf32>
    %133 = arith.mulf %126, %113 : vector<2x12xf32>
    %134 = arith.mulf %125, %131 : vector<2x12xf32>
    %135 = arith.addf %133, %134 : vector<2x12xf32>
    %136 = math.tanh %135 : vector<2x12xf32>
    %137 = arith.mulf %132, %136 : vector<2x12xf32>
    %c0_38 = arith.constant 0 : index
    %c48 = arith.constant 48 : index
    %138 = vector.load %arg4[%c0_38, %c48] : memref<2x96xf32, #tpu.memory_space<vmem>>, vector<2x12xf32>
    tpu.vector_store %arg4[%c0_38, %c48], %137 {strides = array<i32>} : memref<2x96xf32, #tpu.memory_space<vmem>>, vector<2x12xf32>,
    %139 = vector.extract_strided_slice %25 {offsets = [10, 0], sizes = [2, 48], strides = [1, 1]} : vector<16x48xf32> to vector<2x48xf32>
    %cst_39 = arith.constant dense<0.000000e+00> : vector<2x48xf32>
    %140 = tpu.matmul %137, %26, %cst_39 {dimension_numbers = #tpu.dot_dimension_numbers<[1], [0], [0], [1], [0, 0, 1, 1], [], []>} : vector<2x12xf32>, vector<12x48xf32>, vector<2x48xf32> -> vector<2x48xf32>
    %141 = arith.addf %139, %140 : vector<2x48xf32>
    %142 = arith.negf %141 : vector<2x48xf32>
    %143 = math.exp %142 : vector<2x48xf32>
    %cst_40 = arith.constant 1.000000e+00 : f32
    %144 = vector.broadcast %cst_40 : f32 to vector<2x48xf32>
    %145 = arith.addf %144, %143 : vector<2x48xf32>
    %146 = arith.divf %144, %145 : vector<2x48xf32>
    %147 = vector.extract_strided_slice %146 {offsets = [0, 0], sizes = [2, 12], strides = [1, 1]} : vector<2x48xf32> to vector<2x12xf32>
    %148 = vector.extract_strided_slice %146 {offsets = [0, 12], sizes = [2, 12], strides = [1, 1]} : vector<2x48xf32> to vector<2x12xf32>
    %149 = vector.extract_strided_slice %146 {offsets = [0, 24], sizes = [2, 12], strides = [1, 1]} : vector<2x48xf32> to vector<2x12xf32>
    %cst_41 = arith.constant 2.000000e+00 : f32
    %150 = vector.broadcast %cst_41 : f32 to vector<2x12xf32>
    %151 = arith.mulf %150, %149 : vector<2x12xf32>
    %cst_42 = arith.constant 1.000000e+00 : f32
    %152 = vector.broadcast %cst_42 : f32 to vector<2x12xf32>
    %153 = arith.subf %151, %152 : vector<2x12xf32>
    %154 = vector.extract_strided_slice %146 {offsets = [0, 36], sizes = [2, 12], strides = [1, 1]} : vector<2x48xf32> to vector<2x12xf32>
    %155 = arith.mulf %148, %135 : vector<2x12xf32>
    %156 = arith.mulf %147, %153 : vector<2x12xf32>
    %157 = arith.addf %155, %156 : vector<2x12xf32>
    %158 = math.tanh %157 : vector<2x12xf32>
    %159 = arith.mulf %154, %158 : vector<2x12xf32>
    %c0_43 = arith.constant 0 : index
    %c60 = arith.constant 60 : index
    %160 = vector.load %arg4[%c0_43, %c60] : memref<2x96xf32, #tpu.memory_space<vmem>>, vector<2x12xf32>
    tpu.vector_store %arg4[%c0_43, %c60], %159 {strides = array<i32>} : memref<2x96xf32, #tpu.memory_space<vmem>>, vector<2x12xf32>,
    %161 = vector.extract_strided_slice %25 {offsets = [12, 0], sizes = [2, 48], strides = [1, 1]} : vector<16x48xf32> to vector<2x48xf32>
    %cst_44 = arith.constant dense<0.000000e+00> : vector<2x48xf32>
    %162 = tpu.matmul %159, %26, %cst_44 {dimension_numbers = #tpu.dot_dimension_numbers<[1], [0], [0], [1], [0, 0, 1, 1], [], []>} : vector<2x12xf32>, vector<12x48xf32>, vector<2x48xf32> -> vector<2x48xf32>
    %163 = arith.addf %161, %162 : vector<2x48xf32>
    %164 = arith.negf %163 : vector<2x48xf32>
    %165 = math.exp %164 : vector<2x48xf32>
    %cst_45 = arith.constant 1.000000e+00 : f32
    %166 = vector.broadcast %cst_45 : f32 to vector<2x48xf32>
    %167 = arith.addf %166, %165 : vector<2x48xf32>
    %168 = arith.divf %166, %167 : vector<2x48xf32>
    %169 = vector.extract_strided_slice %168 {offsets = [0, 0], sizes = [2, 12], strides = [1, 1]} : vector<2x48xf32> to vector<2x12xf32>
    %170 = vector.extract_strided_slice %168 {offsets = [0, 12], sizes = [2, 12], strides = [1, 1]} : vector<2x48xf32> to vector<2x12xf32>
    %171 = vector.extract_strided_slice %168 {offsets = [0, 24], sizes = [2, 12], strides = [1, 1]} : vector<2x48xf32> to vector<2x12xf32>
    %cst_46 = arith.constant 2.000000e+00 : f32
    %172 = vector.broadcast %cst_46 : f32 to vector<2x12xf32>
    %173 = arith.mulf %172, %171 : vector<2x12xf32>
    %cst_47 = arith.constant 1.000000e+00 : f32
    %174 = vector.broadcast %cst_47 : f32 to vector<2x12xf32>
    %175 = arith.subf %173, %174 : vector<2x12xf32>
    %176 = vector.extract_strided_slice %168 {offsets = [0, 36], sizes = [2, 12], strides = [1, 1]} : vector<2x48xf32> to vector<2x12xf32>
    %177 = arith.mulf %170, %157 : vector<2x12xf32>
    %178 = arith.mulf %169, %175 : vector<2x12xf32>
    %179 = arith.addf %177, %178 : vector<2x12xf32>
    %180 = math.tanh %179 : vector<2x12xf32>
    %181 = arith.mulf %176, %180 : vector<2x12xf32>
    %c0_48 = arith.constant 0 : index
    %c72 = arith.constant 72 : index
    %182 = vector.load %arg4[%c0_48, %c72] : memref<2x96xf32, #tpu.memory_space<vmem>>, vector<2x12xf32>
    tpu.vector_store %arg4[%c0_48, %c72], %181 {strides = array<i32>} : memref<2x96xf32, #tpu.memory_space<vmem>>, vector<2x12xf32>,
    %183 = vector.extract_strided_slice %25 {offsets = [14, 0], sizes = [2, 48], strides = [1, 1]} : vector<16x48xf32> to vector<2x48xf32>
    %cst_49 = arith.constant dense<0.000000e+00> : vector<2x48xf32>
    %184 = tpu.matmul %181, %26, %cst_49 {dimension_numbers = #tpu.dot_dimension_numbers<[1], [0], [0], [1], [0, 0, 1, 1], [], []>} : vector<2x12xf32>, vector<12x48xf32>, vector<2x48xf32> -> vector<2x48xf32>
    %185 = arith.addf %183, %184 : vector<2x48xf32>
    %186 = arith.negf %185 : vector<2x48xf32>
    %187 = math.exp %186 : vector<2x48xf32>
    %cst_50 = arith.constant 1.000000e+00 : f32
    %188 = vector.broadcast %cst_50 : f32 to vector<2x48xf32>
    %189 = arith.addf %188, %187 : vector<2x48xf32>
    %190 = arith.divf %188, %189 : vector<2x48xf32>
    %191 = vector.extract_strided_slice %190 {offsets = [0, 0], sizes = [2, 12], strides = [1, 1]} : vector<2x48xf32> to vector<2x12xf32>
    %192 = vector.extract_strided_slice %190 {offsets = [0, 12], sizes = [2, 12], strides = [1, 1]} : vector<2x48xf32> to vector<2x12xf32>
    %193 = vector.extract_strided_slice %190 {offsets = [0, 24], sizes = [2, 12], strides = [1, 1]} : vector<2x48xf32> to vector<2x12xf32>
    %cst_51 = arith.constant 2.000000e+00 : f32
    %194 = vector.broadcast %cst_51 : f32 to vector<2x12xf32>
    %195 = arith.mulf %194, %193 : vector<2x12xf32>
    %cst_52 = arith.constant 1.000000e+00 : f32
    %196 = vector.broadcast %cst_52 : f32 to vector<2x12xf32>
    %197 = arith.subf %195, %196 : vector<2x12xf32>
    %198 = vector.extract_strided_slice %190 {offsets = [0, 36], sizes = [2, 12], strides = [1, 1]} : vector<2x48xf32> to vector<2x12xf32>
    %199 = arith.mulf %192, %179 : vector<2x12xf32>
    %200 = arith.mulf %191, %197 : vector<2x12xf32>
    %201 = arith.addf %199, %200 : vector<2x12xf32>
    %202 = math.tanh %201 : vector<2x12xf32>
    %203 = arith.mulf %198, %202 : vector<2x12xf32>
    %c0_53 = arith.constant 0 : index
    %c84 = arith.constant 84 : index
    %204 = vector.load %arg4[%c0_53, %c84] : memref<2x96xf32, #tpu.memory_space<vmem>>, vector<2x12xf32>
    tpu.vector_store %arg4[%c0_53, %c84], %203 {strides = array<i32>} : memref<2x96xf32, #tpu.memory_space<vmem>>, vector<2x12xf32>,
    %c160 = arith.constant 160 : index
    %c0_54 = arith.constant 0 : index
    %205 = vector.load %arg0[%c160, %c0_54] : memref<336x128xf32, #tpu.memory_space<vmem>>, vector<36x24xf32>
    %cst_55 = arith.constant dense<0.000000e+00> : vector<2x24xf32>
    %206 = tpu.matmul %14, %205, %cst_55 {dimension_numbers = #tpu.dot_dimension_numbers<[1], [0], [0], [1], [0, 0, 1, 1], [], []>} : vector<2x36xf32>, vector<36x24xf32>, vector<2x24xf32> -> vector<2x24xf32>
    %c0_56 = arith.constant 0 : index
    %c0_57 = arith.constant 0 : index
    %207 = vector.load %arg4[%c0_56, %c0_57] : memref<2x96xf32, #tpu.memory_space<vmem>>, vector<2x96xf32>
    %c200 = arith.constant 200 : index
    %c0_58 = arith.constant 0 : index
    %208 = vector.load %arg0[%c200, %c0_58] : memref<336x128xf32, #tpu.memory_space<vmem>>, vector<96x24xf32>
    %cst_59 = arith.constant dense<0.000000e+00> : vector<2x24xf32>
    %209 = tpu.matmul %207, %208, %cst_59 {dimension_numbers = #tpu.dot_dimension_numbers<[1], [0], [0], [1], [0, 0, 1, 1], [], []>} : vector<2x96xf32>, vector<96x24xf32>, vector<2x24xf32> -> vector<2x24xf32>
    %210 = arith.addf %206, %209 : vector<2x24xf32>
    %c296 = arith.constant 296 : index
    %c0_60 = arith.constant 0 : index
    %211 = vector.load %arg0[%c296, %c0_60] : memref<336x128xf32, #tpu.memory_space<vmem>>, vector<1x24xf32>
    %212 = vector.broadcast %211 : vector<1x24xf32> to vector<2x24xf32>
    %213 = arith.addf %210, %212 : vector<2x24xf32>
    %cst_61 = arith.constant 0.000000e+00 : f32
    %214 = vector.broadcast %cst_61 : f32 to vector<2x24xf32>
    %215 = arith.maximumf %213, %214 : vector<2x24xf32>
    %c304 = arith.constant 304 : index
    %c0_62 = arith.constant 0 : index
    %216 = vector.load %arg0[%c304, %c0_62] : memref<336x128xf32, #tpu.memory_space<vmem>>, vector<24x7xf32>
    %cst_63 = arith.constant dense<0.000000e+00> : vector<2x7xf32>
    %217 = tpu.matmul %215, %216, %cst_63 {dimension_numbers = #tpu.dot_dimension_numbers<[1], [0], [0], [1], [0, 0, 1, 1], [], []>} : vector<2x24xf32>, vector<24x7xf32>, vector<2x7xf32> -> vector<2x7xf32>
    %c328 = arith.constant 328 : index
    %c0_64 = arith.constant 0 : index
    %218 = vector.load %arg0[%c328, %c0_64] : memref<336x128xf32, #tpu.memory_space<vmem>>, vector<1x7xf32>
    %219 = vector.broadcast %218 : vector<1x7xf32> to vector<2x7xf32>
    %220 = arith.addf %217, %219 : vector<2x7xf32>
    %cst_65 = arith.constant dense<0xFF800000> : vector<2xf32>
    %221 = vector.multi_reduction <maximumf>, %220, %cst_65 [1] : vector<2x7xf32> to vector<2xf32>
    %222 = vector.shape_cast %221 : vector<2xf32> to vector<2x1xf32>
    %223 = vector.broadcast %222 : vector<2x1xf32> to vector<2x7xf32>
    %224 = arith.subf %220, %223 : vector<2x7xf32>
    %225 = math.exp %224 : vector<2x7xf32>
    %cst_66 = arith.constant dense<0.000000e+00> : vector<2xf32>
    %226 = vector.multi_reduction <add>, %225, %cst_66 [1] : vector<2x7xf32> to vector<2xf32>
    %227 = vector.shape_cast %226 : vector<2xf32> to vector<2x1xf32>
    %228 = vector.broadcast %227 : vector<2x1xf32> to vector<2x7xf32>
    %229 = arith.divf %225, %228 : vector<2x7xf32>
    %c0_67 = arith.constant 0 : index
    %c0_68 = arith.constant 0 : index
    %230 = vector.load %arg3[%c0_67, %c0_68] : memref<2x7xf32, #tpu.memory_space<vmem>>, vector<2x7xf32>
    tpu.vector_store %arg3[%c0_67, %c0_68], %229 {strides = array<i32>} : memref<2x7xf32, #tpu.memory_space<vmem>>, vector<2x7xf32>,
    return
  }
}

</mosaic_0001>

<bundles_post_ra>
// kernel: actor_forward.1
= control target key start
LH: loop header
LB: loop body
LE: loop exit
PB: predicated region body
PF: predicated region fallthrough
CT: control target
= control target key end

     0   :  { %v993_v2 = vmov 0   ;;  %s1277_s0 = inlined_call_operand.vmem [shape: f32[336,128], index: 0, kind: input, shape index: {}]   ;;  %s1278_s1 = inlined_call_operand.vmem [shape: f32[8,108], index: 1, kind: input, shape index: {}]   ;;  %s1279_s2 = inlined_call_operand.vmem [shape: s32[16,1], index: 2, kind: input, shape index: {}]   ;;  %s1280_s3 = inlined_call_operand.hbm [shape: f32[2,7], index: 3, kind: output, shape index: {}]  }
   0x1   :  { %v71_v0 = vld [vmem:[%s1279_s2] sm:$0xff]  ;;  %910 = vset.pattern.permute.xlu0 %v993_v2 }
   0x2   :  { %v86_v1 = vld [vmem:[%s1277_s0 + $0x80] sm:$0xff]  ;;  %74 = vperm.xlu0 %910, %v71_v0  }
   0x3   :  { %110 = vmatpush.msra.mxu1 %v86_v1 }
   0x4   :  { %8 = vsyncpa [#allocation4], 0  ;;  %v72_v3 = vld [vmem:[%s1279_s2 + $0x8] sm:$0xff]  ;;  %v85_v4 = vld [vmem:[%s1277_s0 + $0x78] sm:$0xff]  ;;  %vm36_vm0 = vcmask 1043456   ;;  %v69_v7 = vlaneseq  ;;  %vm89_vm1 = vcmask 130048  }
   0x5   :  { %111 = vmatpush.msra.mxu1 %v85_v4  ;;  %v1038_v5 = vld [vmem:[%s1277_s0 + $0x98] sm:$0xf]  ;;  %v1049_v6 = vld [vmem:[%s1277_s0 + $0x90] sm:$0xff]  ;;  %v994_v10 = vmov 0.0   ;;  %v911_v15 = vld [vmem:[%s1277_s0 + $0x88] ss:$0 sm:$0xff] }
   0x6   :  { %868 = vmatpush.msk.msra.mxu3 %vm36_vm0, %v1038_v5  ;;  %872 = vmatpush.msk.msra.mxu2 %vm36_vm0, %v1038_v5  ;;  %v70_v8 = vand.u32 127, %v69_v7  ;;  %s995_s25 = smov 104   ;;  %s996_s26 = smov 12   ;;  %vm191_vm8 = vcmask 91136   ;;  %vm121_vm9 = vcmask 97280  }
   0x7   :  { %865 = vmatpush.msk.msrb.mxu1 %vm36_vm0, %v1038_v5  ;;  %s997_s27 = smov 24   ;;  %s998_s28 = smov 92  }
   0x8   :  { %210 = vmatpush.msra.mxu3 %v1049_v6  ;;  %286 = vmatpush.msra.mxu2 %v1049_v6  ;;  %s999_s29 = smov 116   ;;  %s1000_s30 = smov 36  }
   0x9   :  { %143 = vmatpush.msrb.mxu1 %v1049_v6 }
   0xa   :  { %77 = vperm.xlu0 %910, %v72_v3   ;;  %876 = vmatpush.msk.msrb.mxu3 %vm36_vm0, %v1038_v5 }
   0xb   :  { %884 = vmatpush.msk.msrb.mxu2 %vm36_vm0, %v1038_v5 }
   0xc   :  { %362 = vmatpush.msrb.mxu3 %v1049_v6 }
   0xd   :  { %507 = vmatpush.msrb.mxu2 %v1049_v6 }
  0x74   :  { %v75_v9 = vpop.permute.xlu0 %74 }
  0x75   :  { %vm79_vm2 = vcmp.eq.s32.totalorder %v70_v8, %v75_v9 }
  0x76   :  { %v861_v11 = vsel %vm79_vm2, 1.0, %v994_v10 }
  0x77   :  { %863 = vmatmul.msk.f32.vlgmr.msra.gmra.mxu1 %vm89_vm1, %v861_v11 }
  0x78   :  { %880 = vmatpush.msk.msra.mxu1 %vm36_vm0, %v1038_v5 }
  0x7a   :  { %435 = vmatpush.msra.mxu1 %v1049_v6 }
  0x7c   :  { %v78_v12 = vpop.permute.xlu0 %77 }
  0x7d   :  { %vm80_vm3 = vcmp.eq.s32.totalorder %v70_v8, %v78_v12 }
  0x7e   :  { %v862_v13 = vsel %vm80_vm3, 1.0, %v994_v10 }
  0x7f   :  { %864 = vmatmul.msk.f32.gmra.mxu1 %vm89_vm1, %v862_v13 }
  0x87   :  { %144 = vmatmul.f32.vlgmr.msrb.gmra.mxu1 %v994_v10 }
  0x88   :  { %892 = vmatpush.msk.msrb.mxu1 %vm36_vm0, %v1038_v5 }
  0x8a   :  { %659 = vmatpush.msrb.mxu1 %v1049_v6 }
  0xf4   :  { %v113_v14 = vpop.f32.mrf.mxu1 }
  0xf5   :  { %v1071_v18 = vadd.f32 %v911_v15, %v113_v14 }
  0xfc   :  { %v116_v16 = vpop.f32.mrf.mxu1 }
  0xfd   :  { %v1069_v17 = vadd.f32 %v911_v15, %v116_v16 }
 0x104   :  { %v145_v19 = vpop.f32.mrf.mxu1 }
 0x105   :  { %v148_v20 = vadd.f32 %v145_v19, %v1071_v18 }
 0x107   :  { %v866_v21 = vmul.f32 -1.442695, %v148_v20 }
 0x109   :  { %915 = vpow2.f32 %v866_v21 }
 0x10f   :  { %v916_v22 = vpop.eup %915 }
 0x110   :  { %v152_v23 = vadd.f32 1.0, %v916_v22 }
 0x112   :  { %917 = vrcp.f32 %v152_v23  ;;  %v164_v27 = vand.u32 2147483648, %v152_v23  ;;  %v162_v29 = vand.u32 2147483647, %v152_v23  ;;  %vm158_vm5 = vweird.f32 %v152_v23 }
 0x114   :  { %v165_v31 = vor.u32 1.1754944e-38, %v164_v27  ;;  %vm163_vm7 = vcmp.eq.f32.partialorder %v162_v29, 8.507059e+37 }
 0x118   :  { %v918_v24 = vpop.eup %917 }
 0x119   :  { %v154_v25 = vmul.f32 %v918_v24, %v152_v23  ;;  %vm159_vm4 = vweird.f32 %v918_v24 }
 0x11a   :  { %vm160_vm6 = vmor %vm158_vm5, %vm159_vm4 }
 0x11b   :  { %v155_v26 = vsub.f32 1.0, %v154_v25 }
 0x11d   :  { %v156_v28 = vmul.f32 %v918_v24, %v155_v26 }
 0x11f   :  { %v157_v30 = vadd.f32 %v918_v24, %v156_v28 }
 0x121   :  { %v161_v32 = vsel %vm160_vm6, %v918_v24, %v157_v30 }
 0x122   :  { %v166_v33 = vsel %vm163_vm7, %v165_v31, %v161_v32 }
 0x123   :  { %v168_v34 = vmul.f32 2.0, %v166_v33  ;;  %v170_v38 = vmul.f32 0.0, %v166_v33 }
 0x125   :  { %v867_v35 = vadd.f32 -1.0, %v168_v34 }
 0x127   :  { %172 = vrot.lane.b32.xlu1 %v867_v35, %s995_s25 }
 0x199   :  { %v173_v36 = vpop.permute.xlu1 %172 }
 0x19a   :  { %v175_v37 = vmul.f32 %v173_v36, %v166_v33 }
 0x19c   :  { %177 = vrot.lane.b32.xlu1 %v175_v37, %s996_s26 }
 0x20e   :  { %v178_v39 = vpop.permute.xlu1 %177 }
 0x20f   :  { %v180_v40 = vadd.f32 %v178_v39, %v170_v38 }
 0x211   :  { %919 = vtanh.f32 %v180_v40  ;;  %v241_v1 = vrot.slane %v180_v40, 6 }
 0x217   :  { %v920_v41 = vpop.eup %919 }
 0x218   :  { %183 = vrot.lane.b32.xlu2 %v920_v41, %s997_s27 }
 0x272   :  { %v184_v42 = vpop.permute.xlu2 %183 }
 0x273   :  { %v186_v43 = vmul.f32 %v184_v42, %v166_v33 }
 0x275   :  { %188 = vrot.lane.b32.xlu2 %v186_v43, %s998_s28 }
 0x2cf   :  { %v189_v44 = vpop.permute.xlu2 %188 }
 0x2d0   :  { %192 = vst.msk [vmem:[#allocation2] sm:$0x3] %vm191_vm8, %v189_v44  ;;  %869 = vmatmul.msk.f32.vlgmr.msra.gmra.mxu3 %vm121_vm9, %v189_v44 }
 0x2d1   :  { %888 = vmatpush.msk.msra.mxu3 %vm36_vm0, %v1038_v5 }
 0x2d3   :  { %583 = vmatpush.msra.mxu3 %v1049_v6 }
 0x353   :  { %v212_v45 = vpop.f32.mrf.mxu3 }
 0x354   :  { %v216_v46 = vrot.slane %v212_v45, 6 }
 0x356   :  { %v218_v47 = vadd.f32 %v216_v46, %v1071_v18 }
 0x358   :  { %v870_v48 = vmul.f32 -1.442695, %v218_v47 }
 0x35a   :  { %921 = vpow2.f32 %v870_v48 }
 0x360   :  { %v922_v49 = vpop.eup %921 }
 0x361   :  { %v222_v50 = vadd.f32 1.0, %v922_v49 }
 0x363   :  { %923 = vrcp.f32 %v222_v50  ;;  %v234_v54 = vand.u32 2147483648, %v222_v50  ;;  %v232_v56 = vand.u32 2147483647, %v222_v50  ;;  %vm228_vm11 = vweird.f32 %v222_v50 }
 0x365   :  { %v235_v58 = vor.u32 1.1754944e-38, %v234_v54  ;;  %vm233_vm13 = vcmp.eq.f32.partialorder %v232_v56, 8.507059e+37 }
 0x369   :  { %v924_v51 = vpop.eup %923 }
 0x36a   :  { %v224_v52 = vmul.f32 %v924_v51, %v222_v50  ;;  %vm229_vm10 = vweird.f32 %v924_v51 }
 0x36b   :  { %vm230_vm12 = vmor %vm228_vm11, %vm229_vm10 }
 0x36c   :  { %v225_v53 = vsub.f32 1.0, %v224_v52 }
 0x36e   :  { %v226_v55 = vmul.f32 %v924_v51, %v225_v53 }
 0x370   :  { %v227_v57 = vadd.f32 %v924_v51, %v226_v55 }
 0x372   :  { %v231_v59 = vsel %vm230_vm12, %v924_v51, %v227_v57 }
 0x373   :  { %v236_v60 = vsel %vm233_vm13, %v235_v58, %v231_v59 }
 0x374   :  { %v238_v61 = vmul.f32 2.0, %v236_v60  ;;  %v243_v2 = vmul.f32 %v241_v1, %v236_v60 }
 0x376   :  { %v871_v62 = vadd.f32 -1.0, %v238_v61 }
 0x378   :  { %245 = vrot.lane.b32.xlu0 %v871_v62, %s995_s25 }
 0x3ea   :  { %v246_v63 = vpop.permute.xlu0 %245 }
 0x3eb   :  { %v248_v0 = vmul.f32 %v246_v63, %v236_v60 }
 0x3ed   :  { %250 = vrot.lane.b32.xlu1 %v248_v0, %s996_s26 }
 0x45f   :  { %v251_v3 = vpop.permute.xlu1 %250 }
 0x460   :  { %v253_v4 = vadd.f32 %v251_v3, %v243_v2 }
 0x462   :  { %925 = vtanh.f32 %v253_v4  ;;  %v317_v32 = vrot.slane %v253_v4, 6 }
 0x468   :  { %v926_v5 = vpop.eup %925 }
 0x469   :  { %256 = vrot.lane.b32.xlu2 %v926_v5, %s997_s27 }
 0x4c3   :  { %v257_v6 = vpop.permute.xlu2 %256 }
 0x4c4   :  { %v1086_v7 = vmul.f32 %v257_v6, %v236_v60 }
 0x4c6   :  { %v266_v8 = vrot.slane %v1086_v7, 2 }
 0x4c8   :  { %267 = vrot.lane.b32.xlu0 %v266_v8, %s998_s28 }
 0x53a   :  { %v268_v9 = vpop.permute.xlu0 %267 }
 0x53b   :  { %873 = vmatmul.msk.f32.vlgmr.msra.gmra.mxu2 %vm121_vm9, %v268_v9 }
 0x5be   :  { %v288_v10 = vpop.f32.mrf.mxu2 }
 0x5bf   :  { %v292_v11 = vrot.slane %v288_v10, 4 }
 0x5c1   :  { %v294_v12 = vadd.f32 %v292_v11, %v1071_v18 }
 0x5c3   :  { %v874_v13 = vmul.f32 -1.442695, %v294_v12 }
 0x5c5   :  { %927 = vpow2.f32 %v874_v13 }
 0x5cb   :  { %v928_v14 = vpop.eup %927 }
 0x5cc   :  { %v298_v15 = vadd.f32 1.0, %v928_v14 }
 0x5ce   :  { %929 = vrcp.f32 %v298_v15  ;;  %v310_v21 = vand.u32 2147483648, %v298_v15  ;;  %v308_v23 = vand.u32 2147483647, %v298_v15  ;;  %vm304_vm15 = vweird.f32 %v298_v15 }
 0x5d0   :  { %v311_v25 = vor.u32 1.1754944e-38, %v310_v21  ;;  %vm309_vm2 = vcmp.eq.f32.partialorder %v308_v23, 8.507059e+37 }
 0x5d4   :  { %v930_v16 = vpop.eup %929 }
 0x5d5   :  { %v300_v19 = vmul.f32 %v930_v16, %v298_v15  ;;  %vm305_vm14 = vweird.f32 %v930_v16 }
 0x5d6   :  { %vm306_vm1 = vmor %vm304_vm15, %vm305_vm14 }
 0x5d7   :  { %v301_v20 = vsub.f32 1.0, %v300_v19 }
 0x5d9   :  { %v302_v22 = vmul.f32 %v930_v16, %v301_v20 }
 0x5db   :  { %v303_v24 = vadd.f32 %v930_v16, %v302_v22 }
 0x5dd   :  { %v307_v26 = vsel %vm306_vm1, %v930_v16, %v303_v24 }
 0x5de   :  { %v312_v27 = vsel %vm309_vm2, %v311_v25, %v307_v26 }
 0x5df   :  { %v314_v28 = vmul.f32 2.0, %v312_v27  ;;  %v319_v33 = vmul.f32 %v317_v32, %v312_v27 }
 0x5e1   :  { %v875_v29 = vadd.f32 -1.0, %v314_v28 }
 0x5e3   :  { %321 = vrot.lane.b32.xlu1 %v875_v29, %s995_s25 }
 0x655   :  { %v322_v30 = vpop.permute.xlu1 %321 }
 0x656   :  { %v324_v31 = vmul.f32 %v322_v30, %v312_v27 }
 0x658   :  { %326 = vrot.lane.b32.xlu2 %v324_v31, %s996_s26 }
 0x6b2   :  { %v327_v34 = vpop.permute.xlu2 %326 }
 0x6b3   :  { %v329_v35 = vadd.f32 %v327_v34, %v319_v33 }
 0x6b5   :  { %931 = vtanh.f32 %v329_v35  ;;  %v393_v60 = vrot.slane %v329_v35, 6 }
 0x6bb   :  { %v932_v36 = vpop.eup %931 }
 0x6bc   :  { %332 = vrot.lane.b32.xlu0 %v932_v36, %s997_s27 }
 0x72e   :  { %v333_v37 = vpop.permute.xlu0 %332 }
 0x72f   :  { %v1095_v38 = vmul.f32 %v333_v37, %v312_v27 }
 0x731   :  { %v342_v39 = vrot.slane %v1095_v38, 4 }
 0x733   :  { %343 = vrot.lane.b32.xlu1 %v342_v39, %s998_s28 }
 0x7a5   :  { %v344_v40 = vpop.permute.xlu1 %343 }
 0x7a6   :  { %877 = vmatmul.msk.f32.vlgmr.msrb.gmra.mxu3 %vm121_vm9, %v344_v40 }
 0x829   :  { %v364_v41 = vpop.f32.mrf.mxu3 }
 0x82a   :  { %v368_v42 = vrot.slane %v364_v41, 2 }
 0x82c   :  { %v370_v43 = vadd.f32 %v368_v42, %v1071_v18 }
 0x82e   :  { %v878_v44 = vmul.f32 -1.442695, %v370_v43 }
 0x830   :  { %933 = vpow2.f32 %v878_v44 }
 0x836   :  { %v934_v45 = vpop.eup %933 }
 0x837   :  { %v374_v46 = vadd.f32 1.0, %v934_v45 }
 0x839   :  { %935 = vrcp.f32 %v374_v46  ;;  %v386_v50 = vand.u32 2147483648, %v374_v46  ;;  %v384_v52 = vand.u32 2147483647, %v374_v46  ;;  %vm380_vm4 = vweird.f32 %v374_v46 }
 0x83b   :  { %v387_v54 = vor.u32 1.1754944e-38, %v386_v50  ;;  %vm385_vm6 = vcmp.eq.f32.partialorder %v384_v52, 8.507059e+37 }
 0x83f   :  { %v936_v47 = vpop.eup %935 }
 0x840   :  { %v376_v48 = vmul.f32 %v936_v47, %v374_v46  ;;  %vm381_vm3 = vweird.f32 %v936_v47 }
 0x841   :  { %vm382_vm5 = vmor %vm380_vm4, %vm381_vm3 }
 0x842   :  { %v377_v49 = vsub.f32 1.0, %v376_v48 }
 0x844   :  { %v378_v51 = vmul.f32 %v936_v47, %v377_v49 }
 0x846   :  { %v379_v53 = vadd.f32 %v936_v47, %v378_v51 }
 0x848   :  { %v383_v55 = vsel %vm382_vm5, %v936_v47, %v379_v53 }
 0x849   :  { %v388_v56 = vsel %vm385_vm6, %v387_v54, %v383_v55 }
 0x84a   :  { %v390_v18 = vmul.f32 2.0, %v388_v56  ;;  %v395_v61 = vmul.f32 %v393_v60, %v388_v56 }
 0x84c   :  { %v879_v57 = vadd.f32 -1.0, %v390_v18 }
 0x84e   :  { %397 = vrot.lane.b32.xlu2 %v879_v57, %s995_s25 }
 0x8a8   :  { %v398_v58 = vpop.permute.xlu2 %397 }
 0x8a9   :  { %v400_v59 = vmul.f32 %v398_v58, %v388_v56 }
 0x8ab   :  { %402 = vrot.lane.b32.xlu0 %v400_v59, %s996_s26 }
 0x91d   :  { %v403_v62 = vpop.permute.xlu0 %402 }
 0x91e   :  { %v405_v63 = vadd.f32 %v403_v62, %v395_v61 }
 0x920   :  { %937 = vtanh.f32 %v405_v63  ;;  %v463_v27 = vrot.slane %v405_v63, 6 }
 0x926   :  { %v938_v0 = vpop.eup %937 }
 0x927   :  { %408 = vrot.lane.b32.xlu1 %v938_v0, %s997_s27 }
 0x999   :  { %v409_v1 = vpop.permute.xlu1 %408 }
 0x99a   :  { %v1104_v2 = vmul.f32 %v409_v1, %v388_v56 }
 0x99c   :  { %v415_v3 = vrot.slane %v1104_v2, 6 }
 0x99e   :  { %416 = vrot.lane.b32.xlu2 %v415_v3, %s998_s28 }
 0x9f8   :  { %v417_v4 = vpop.permute.xlu2 %416 }
 0x9f9   :  { %881 = vmatmul.msk.f32.vlgmr.msra.gmra.mxu1 %vm121_vm9, %v417_v4 }
 0xa76   :  { %v437_v5 = vpop.f32.mrf.mxu1 }
 0xa77   :  { %v440_v6 = vadd.f32 %v437_v5, %v1069_v17 }
 0xa79   :  { %v882_v8 = vmul.f32 -1.442695, %v440_v6 }
 0xa7b   :  { %939 = vpow2.f32 %v882_v8 }
 0xa81   :  { %v940_v9 = vpop.eup %939 }
 0xa82   :  { %v444_v10 = vadd.f32 1.0, %v940_v9 }
 0xa84   :  { %941 = vrcp.f32 %v444_v10  ;;  %v456_v14 = vand.u32 2147483648, %v444_v10  ;;  %v454_v16 = vand.u32 2147483647, %v444_v10  ;;  %vm450_vm8 = vweird.f32 %v444_v10 }
 0xa86   :  { %v457_v20 = vor.u32 1.1754944e-38, %v456_v14  ;;  %vm455_vm11 = vcmp.eq.f32.partialorder %v454_v16, 8.507059e+37 }
 0xa8a   :  { %v942_v11 = vpop.eup %941 }
 0xa8b   :  { %v446_v12 = vmul.f32 %v942_v11, %v444_v10  ;;  %vm451_vm7 = vweird.f32 %v942_v11 }
 0xa8c   :  { %vm452_vm10 = vmor %vm450_vm8, %vm451_vm7  ;;  %vm264_vm8 = vcmask 191586  }
 0xa8d   :  { %v447_v13 = vsub.f32 1.0, %v446_v12 }
 0xa8f   :  { %v448_v15 = vmul.f32 %v942_v11, %v447_v13 }
 0xa91   :  { %v449_v19 = vadd.f32 %v942_v11, %v448_v15 }
 0xa93   :  { %v453_v21 = vsel %vm452_vm10, %v942_v11, %v449_v19  ;;  %vm340_vm10 = vcmask 292036  }
 0xa94   :  { %v458_v22 = vsel %vm455_vm11, %v457_v20, %v453_v21  ;;  %vm412_vm11 = vcmask 392486  }
 0xa95   :  { %v460_v23 = vmul.f32 2.0, %v458_v22  ;;  %v465_v28 = vmul.f32 %v463_v27, %v458_v22 }
 0xa97   :  { %v883_v24 = vadd.f32 -1.0, %v460_v23 }
 0xa99   :  { %467 = vrot.lane.b32.xlu0 %v883_v24, %s995_s25 }
 0xb0b   :  { %v468_v25 = vpop.permute.xlu0 %467 }
 0xb0c   :  { %v470_v26 = vmul.f32 %v468_v25, %v458_v22 }
 0xb0e   :  { %472 = vrot.lane.b32.xlu1 %v470_v26, %s996_s26 }
 0xb80   :  { %v473_v29 = vpop.permute.xlu1 %472 }
 0xb81   :  { %v475_v30 = vadd.f32 %v473_v29, %v465_v28 }
 0xb83   :  { %943 = vtanh.f32 %v475_v30  ;;  %v538_v56 = vrot.slane %v475_v30, 6 }
 0xb89   :  { %v944_v31 = vpop.eup %943 }
 0xb8a   :  { %478 = vrot.lane.b32.xlu2 %v944_v31, %s997_s27 }
 0xbe4   :  { %v479_v32 = vpop.permute.xlu2 %478 }
 0xbe5   :  { %v1113_v33 = vmul.f32 %v479_v32, %v458_v22 }
 0xbe7   :  { %488 = vrot.lane.b32.xlu0 %v1113_v33, %s998_s28 }
 0xc59   :  { %v489_v34 = vpop.permute.xlu0 %488 }
 0xc5a   :  { %885 = vmatmul.msk.f32.vlgmr.msrb.gmra.mxu2 %vm121_vm9, %v489_v34 }
 0xcdd   :  { %v509_v35 = vpop.f32.mrf.mxu2 }
 0xcde   :  { %v513_v36 = vrot.slane %v509_v35, 6 }
 0xce0   :  { %v515_v37 = vadd.f32 %v513_v36, %v1069_v17 }
 0xce2   :  { %v886_v39 = vmul.f32 -1.442695, %v515_v37 }
 0xce4   :  { %945 = vpow2.f32 %v886_v39 }
 0xcea   :  { %v946_v40 = vpop.eup %945 }
 0xceb   :  { %v519_v41 = vadd.f32 1.0, %v946_v40 }
 0xced   :  { %947 = vrcp.f32 %v519_v41  ;;  %v531_v45 = vand.u32 2147483648, %v519_v41  ;;  %v529_v47 = vand.u32 2147483647, %v519_v41  ;;  %vm525_vm13 = vweird.f32 %v519_v41 }
 0xcef   :  { %v532_v49 = vor.u32 1.1754944e-38, %v531_v45  ;;  %vm530_vm15 = vcmp.eq.f32.partialorder %v529_v47, 8.507059e+37 }
 0xcf3   :  { %v948_v42 = vpop.eup %947 }
 0xcf4   :  { %v521_v43 = vmul.f32 %v948_v42, %v519_v41  ;;  %vm526_vm12 = vweird.f32 %v948_v42 }
 0xcf5   :  { %vm527_vm14 = vmor %vm525_vm13, %vm526_vm12  ;;  %vm32_vm12 = vcmask 883712   ;;  %vm486_vm13 = vcmask 484736  }
 0xcf6   :  { %v522_v44 = vsub.f32 1.0, %v521_v43 }
 0xcf8   :  { %v523_v46 = vmul.f32 %v948_v42, %v522_v44 }
 0xcfa   :  { %v524_v48 = vadd.f32 %v948_v42, %v523_v46 }
 0xcfc   :  { %v528_v50 = vsel %vm527_vm14, %v948_v42, %v524_v48  ;;  %vm561_vm14 = vcmask 585186  }
 0xcfd   :  { %v533_v51 = vsel %vm530_vm15, %v532_v49, %v528_v50  ;;  %vm637_vm15 = vcmask 685636  }
 0xcfe   :  { %v535_v52 = vmul.f32 2.0, %v533_v51  ;;  %v540_v18 = vmul.f32 %v538_v56, %v533_v51  ;;  %v27_v56 = vld [vmem:[%s1277_s0 + $0x58] sm:$0xff] }
 0xd00   :  { %v887_v53 = vadd.f32 -1.0, %v535_v52 }
 0xd02   :  { %542 = vrot.lane.b32.xlu1 %v887_v53, %s995_s25 }
 0xd74   :  { %v543_v54 = vpop.permute.xlu1 %542 }
 0xd75   :  { %v545_v55 = vmul.f32 %v543_v54, %v533_v51 }
 0xd77   :  { %547 = vrot.lane.b32.xlu2 %v545_v55, %s996_s26  ;;  %v28_v55 = vld [vmem:[%s1277_s0 + $0x60] sm:$0xff] }
 0xdd1   :  { %v548_v57 = vpop.permute.xlu2 %547 }
 0xdd2   :  { %v550_v58 = vadd.f32 %v548_v57, %v540_v18  ;;  %v25_v18 = vld [vmem:[%s1277_s0 + $0x48] sm:$0xff]  ;;  %v24_v57 = vld [vmem:[%s1277_s0 + $0x40] sm:$0xff] }
 0xdd4   :  { %949 = vtanh.f32 %v550_v58  ;;  %v614_v24 = vrot.slane %v550_v58, 6  ;;  %v23_v58 = vld [vmem:[%s1277_s0 + $0x38] sm:$0xff] }
 0xdda   :  { %v950_v59 = vpop.eup %949 }
 0xddb   :  { %553 = vrot.lane.b32.xlu0 %v950_v59, %s997_s27 }
 0xe4d   :  { %v554_v60 = vpop.permute.xlu0 %553 }
 0xe4e   :  { %v1122_v61 = vmul.f32 %v554_v60, %v533_v51  ;;  %v22_v60 = vld [vmem:[%s1277_s0 + $0x30] sm:$0xff] }
 0xe50   :  { %v563_v62 = vrot.slane %v1122_v61, 2 }
 0xe52   :  { %564 = vrot.lane.b32.xlu1 %v563_v62, %s998_s28 }
 0xec4   :  { %v565_v63 = vpop.permute.xlu1 %564 }
 0xec5   :  { %889 = vmatmul.msk.f32.vlgmr.msra.gmra.mxu3 %vm121_vm9, %v565_v63  ;;  %v21_v63 = vld [vmem:[%s1277_s0 + $0x28] sm:$0xff] }
 0xf48   :  { %v585_v0 = vpop.f32.mrf.mxu3 }
 0xf49   :  { %v589_v1 = vrot.slane %v585_v0, 4 }
 0xf4b   :  { %v591_v3 = vadd.f32 %v589_v1, %v1069_v17  ;;  %v20_v1 = vld [vmem:[%s1277_s0 + $0x20] sm:$0xff] }
 0xf4d   :  { %v890_v4 = vmul.f32 -1.442695, %v591_v3  ;;  %v19_v3 = vld [vmem:[%s1277_s0 + $0x18] sm:$0xff] }
 0xf4f   :  { %951 = vpow2.f32 %v890_v4  ;;  %v18_v4 = vld [vmem:[%s1277_s0 + $0x10] sm:$0xff] }
 0xf55   :  { %v952_v5 = vpop.eup %951 }
 0xf56   :  { %v595_v6 = vadd.f32 1.0, %v952_v5 }
 0xf58   :  { %953 = vrcp.f32 %v595_v6  ;;  %v607_v11 = vand.u32 2147483648, %v595_v6  ;;  %v605_v13 = vand.u32 2147483647, %v595_v6  ;;  %vm601_vm2 = vweird.f32 %v595_v6 }
 0xf5a   :  { %v608_v15 = vor.u32 1.1754944e-38, %v607_v11  ;;  %vm606_vm4 = vcmp.eq.f32.partialorder %v605_v13, 8.507059e+37  ;;  %v732_v11 = vld [vmem:[%s1277_s0 + $0x120] sm:$0xff] }
 0xf5b   :  { %741 = vmatpush.msra.mxu2 %v732_v11 }
 0xf5e   :  { %v954_v8 = vpop.eup %953 }
 0xf5f   :  { %v597_v9 = vmul.f32 %v954_v8, %v595_v6  ;;  %vm602_vm1 = vweird.f32 %v954_v8  ;;  %v17_v6 = vld [vmem:[%s1277_s0 + $0x8] sm:$0xff] }
 0xf60   :  { %vm603_vm3 = vmor %vm601_vm2, %vm602_vm1  ;;  %vm713_vm1 = vcmask 786086   ;;  %vm733_vm2 = vcmask 785408  }
 0xf61   :  { %v598_v10 = vsub.f32 1.0, %v597_v9  ;;  %v16_v9 = vld [vmem:[%s1277_s0] sm:$0xff] }
 0xf63   :  { %v599_v12 = vmul.f32 %v954_v8, %v598_v10  ;;  %v15_v10 = vld [vmem:[%s1278_s1] sm:$0xff]  ;;  %s1001_s1 = smov 48  }
 0xf65   :  { %v600_v14 = vadd.f32 %v954_v8, %v599_v12  ;;  %v731_v12 = vld [vmem:[%s1277_s0 + $0x118] sm:$0xff] }
 0xf66   :  { %742 = vmatpush.msra.mxu2 %v731_v12 }
 0xf67   :  { %v604_v16 = vsel %vm603_vm3, %v954_v8, %v600_v14  ;;  %vm793_vm3 = vcmask 195584  }
 0xf68   :  { %v609_v19 = vsel %vm606_vm4, %v608_v15, %v604_v16  ;;  %vm817_vm4 = vcmask 50176  }
 0xf69   :  { %v611_v20 = vmul.f32 2.0, %v609_v19  ;;  %v616_v25 = vmul.f32 %v614_v24, %v609_v19  ;;  %v717_v24 = vld [vmem:[%s1277_s0 + $0xb0] sm:$0xff] }
 0xf6b   :  { %v891_v21 = vadd.f32 -1.0, %v611_v20  ;;  %v728_v20 = vld [vmem:[%s1277_s0 + $0x100] sm:$0xff] }
 0xf6d   :  { %618 = vrot.lane.b32.xlu2 %v891_v21, %s995_s25  ;;  %v719_v21 = vld [vmem:[%s1277_s0 + $0xc0] sm:$0xf] }
 0xf6e   :  { %897 = vmatpush.msk.msrb.mxu3 %vm36_vm0, %v719_v21 }
 0xfc7   :  { %v619_v22 = vpop.permute.xlu2 %618 }
 0xfc8   :  { %v621_v23 = vmul.f32 %v619_v22, %v609_v19  ;;  %v718_v22 = vld [vmem:[%s1277_s0 + $0xb8] sm:$0xff] }
 0xfc9   :  { %776 = vmatpush.msrb.mxu3 %v718_v22 }
 0xfca   :  { %623 = vrot.lane.b32.xlu0 %v621_v23, %s996_s26  ;;  %v727_v23 = vld [vmem:[%s1277_s0 + $0xf8] sm:$0xff] }
 0xfcb   :  { %777 = vmatpush.msrb.mxu3 %v717_v24 }
0x103c   :  { %v624_v26 = vpop.permute.xlu0 %623 }
0x103d   :  { %v1130_v27 = vadd.f32 %v624_v26, %v616_v25  ;;  %v726_v25 = vld [vmem:[%s1277_s0 + $0xf0] sm:$0xff]  ;;  %v725_v26 = vld [vmem:[%s1277_s0 + $0xe8] sm:$0xff] }
0x103f   :  { %955 = vtanh.f32 %v1130_v27  ;;  %v690_v59 = vrot.slane %v1130_v27, 6  ;;  %v912_v27 = vld [vmem:[%s1277_s0 + $0x70] ss:$0 sm:$0xff] }
0x1045   :  { %v956_v28 = vpop.eup %955 }
0x1046   :  { %629 = vrot.lane.b32.xlu1 %v956_v28, %s997_s27 }
0x10b8   :  { %v630_v29 = vpop.permute.xlu1 %629 }
0x10b9   :  { %v632_v30 = vmul.f32 %v630_v29, %v609_v19  ;;  %v729_v19 = vld [vmem:[%s1277_s0 + $0x108] sm:$0xff] }
0x10bb   :  { %v639_v31 = vrot.slane %v632_v30, 4 }
0x10bd   :  { %640 = vrot.lane.b32.xlu2 %v639_v31, %s998_s28 }
0x1117   :  { %v641_v32 = vpop.permute.xlu2 %640 }
0x1118   :  { %893 = vmatmul.msk.f32.vlgmr.msrb.gmra.mxu1 %vm121_vm9, %v641_v32 }
0x1195   :  { %v661_v34 = vpop.f32.mrf.mxu1 }
0x1196   :  { %v665_v35 = vrot.slane %v661_v34, 2 }
0x1198   :  { %v667_v36 = vadd.f32 %v665_v35, %v1069_v17 }
0x119a   :  { %v894_v37 = vmul.f32 -1.442695, %v667_v36  ;;  %v724_v36 = vld [vmem:[%s1277_s0 + $0xe0] sm:$0xff] }
0x119c   :  { %957 = vpow2.f32 %v894_v37  ;;  %v716_v37 = vld [vmem:[%s1277_s0 + $0xa8] sm:$0xff] }
0x119d   :  { %778 = vmatpush.msrb.mxu3 %v716_v37 }
0x11a2   :  { %v958_v39 = vpop.eup %957 }
0x11a3   :  { %v671_v40 = vadd.f32 1.0, %v958_v39  ;;  %v723_v39 = vld [vmem:[%s1277_s0 + $0xd8] sm:$0xff] }
0x11a5   :  { %959 = vrcp.f32 %v671_v40  ;;  %v683_v44 = vand.u32 2147483648, %v671_v40  ;;  %v681_v46 = vand.u32 2147483647, %v671_v40  ;;  %vm677_vm6 = vweird.f32 %v671_v40 }
0x11a7   :  { %v684_v48 = vor.u32 1.1754944e-38, %v683_v44  ;;  %vm682_vm9 = vcmp.eq.f32.partialorder %v681_v46, 8.507059e+37  ;;  %v789_v46 = vld [vmem:[%s1277_s0 + $0x138] sm:$0xff] }
0x11ab   :  { %v960_v41 = vpop.eup %959 }
0x11ac   :  { %v673_v42 = vmul.f32 %v960_v41, %v671_v40  ;;  %vm678_vm5 = vweird.f32 %v960_v41  ;;  %v715_v40 = vld [vmem:[%s1277_s0 + $0xa0] sm:$0xff] }
0x11ad   :  { %vm679_vm7 = vmor %vm677_vm6, %vm678_vm5  ;;  %779 = vmatpush.msrb.mxu3 %v715_v40 }
0x11ae   :  { %v674_v43 = vsub.f32 1.0, %v673_v42  ;;  %v721_v42 = vld [vmem:[%s1277_s0 + $0xc8] sm:$0xff] }
0x11b0   :  { %v675_v45 = vmul.f32 %v960_v41, %v674_v43 }
0x11b2   :  { %v676_v47 = vadd.f32 %v960_v41, %v675_v45  ;;  %v790_v45 = vld [vmem:[%s1277_s0 + $0x140] sm:$0xff] }
0x11b4   :  { %v680_v49 = vsel %vm679_vm7, %v960_v41, %v676_v47  ;;  %v722_v41 = vld [vmem:[%s1277_s0 + $0xd0] sm:$0xff] }
0x11b5   :  { %v1137_v50 = vsel %vm682_vm9, %v684_v48, %v680_v49  ;;  %v788_v47 = vld [vmem:[%s1277_s0 + $0x130] sm:$0xff]  ;;  %v913_v48 = vld [vmem:[%s1277_s0 + $0x128] ss:$0 sm:$0xff] }
0x11b6   :  { %v687_v17 = vmul.f32 2.0, %v1137_v50 }
0x11b8   :  { %v895_v51 = vadd.f32 -1.0, %v687_v17 }
0x11ba   :  { %694 = vrot.lane.b32.xlu0 %v895_v51, %s995_s25 }
0x11c2   :  { %261 = vrot.lane.b32.xlu0 %v1086_v7, %s995_s25  ;;  %v29_v7 = vld [vmem:[%s1277_s0 + $0x68] sm:$0xf]  ;;  %s850_s25 = sshll.u32 %s1280_s3, 4  ;;  %s851_s25 = int_to_ptr.hbm [resolvable:$true] %s850_s25 }
0x11c3   :  { %859 = vmatpush.msk.msra.mxu0 %vm36_vm0, %v29_v7  ;;  %vm757_vm0 = vcmask 293888  }
0x11c5   :  { %43 = vmatpush.msra.mxu0 %v28_v55 }
0x11c7   :  { %44 = vmatpush.msra.mxu0 %v27_v56 }
0x11ca   :  { %558 = vrot.lane.b32.xlu0 %v1122_v61, %s997_s27  ;;  %v692_v61 = vmul.f32 %v690_v59, %v1137_v50 }
0x122c   :  { %v695_v52 = vpop.permute.xlu0 %694 }
0x122d   :  { %v697_v53 = vmul.f32 %v695_v52, %v1137_v50 }
0x122f   :  { %699 = vrot.lane.b32.xlu1 %v697_v53, %s996_s26  ;;  %v914_v53 = vld [vmem:[%s1277_s0 + $0x148] ss:$0 sm:$0xff] }
0x1234   :  { %v262_v54 = vpop.permute.xlu0 %261 }
0x1235   :  { %265 = vst.msk [vmem:[#allocation2 - $0x2] sm:$0xc] %vm264_vm8, %v262_v54 }
0x1237   :  { %337 = vrot.lane.b32.xlu1 %v1095_v38, %s999_s29  ;;  %v26_v38 = vld [vmem:[%s1277_s0 + $0x50] sm:$0xff] }
0x1238   :  { %45 = vmatpush.msra.mxu0 %v26_v38 }
0x123a   :  { %46 = vmatpush.msra.mxu0 %v25_v18 }
0x123c   :  { %47 = vmatpush.msra.mxu0 %v24_v57  ;;  %v559_v15 = vpop.permute.xlu0 %558 }
0x123e   :  { %48 = vmatpush.msra.mxu0 %v23_v58 }
0x123f   :  { %634 = vrot.lane.b32.xlu1 %v632_v30, %s1000_s30 }
0x1240   :  { %49 = vmatpush.msra.mxu0 %v22_v60 }
0x1242   :  { %50 = vmatpush.msra.mxu0 %v21_v63 }
0x1244   :  { %51 = vmatpush.msra.mxu0 %v20_v1 }
0x1246   :  { %52 = vmatpush.msra.mxu0 %v19_v3 }
0x1248   :  { %53 = vmatpush.msra.mxu0 %v18_v4 }
0x124a   :  { %54 = vmatpush.msra.mxu0 %v17_v6 }
0x124c   :  { %55 = vmatpush.msra.mxu0 %v16_v9 }
0x124d   :  { %860 = vmatmul.msk.f32.vlgmr.msra.gmra.mxu0 %vm32_vm12, %v15_v10 }
0x124e   :  { %810 = vmatpush.msrb.mxu0 %v790_v45 }
0x1250   :  { %811 = vmatpush.msrb.mxu0 %v789_v46 }
0x1252   :  { %812 = vmatpush.msrb.mxu0 %v788_v47 }
0x12a1   :  { %v700_v62 = vpop.permute.xlu1 %699 }
0x12a2   :  { %v702_v0 = vadd.f32 %v700_v62, %v692_v61 }
0x12a4   :  { %961 = vtanh.f32 %v702_v0 }
0x12a9   :  { %v338_v5 = vpop.permute.xlu1 %337 }
0x12aa   :  { %v962_v8 = vpop.eup %961  ;;  %341 = vst.msk [vmem:[#allocation2 - $0x4] sm:$0x30] %vm340_vm10, %v338_v5 }
0x12ab   :  { %705 = vrot.lane.b32.xlu2 %v962_v8, %s997_s27  ;;  %413 = vst.msk [vmem:[#allocation2 - $0x6] sm:$0xc0] %vm412_vm11, %v1104_v2  ;;  %v730_v2 = vld [vmem:[%s1277_s0 + $0x110] sm:$0xff]  ;;  %s1002_s0 = smov [#allocation3]  }
0x12ac   :  { %743 = vmatpush.msra.mxu2 %v730_v2  ;;  %s848_s22 = sshll.u32 %s1002_s0, 4  ;;  %s849_s22 = int_to_ptr.vmem [resolvable:$true] %s848_s22 }
0x12ae   :  { %744 = vmatpush.msra.mxu2 %v729_v19 }
0x12b0   :  { %745 = vmatpush.msra.mxu2 %v728_v20 }
0x12b1   :  { %v635_v16 = vpop.permute.xlu1 %634 }
0x12b2   :  { %746 = vmatpush.msra.mxu2 %v727_v23 }
0x12b3   :  { %483 = vrot.lane.b32.xlu2 %v1113_v33, %s996_s26 }
0x12b4   :  { %747 = vmatpush.msra.mxu2 %v726_v25 }
0x12b6   :  { %748 = vmatpush.msra.mxu2 %v725_v26 }
0x12b8   :  { %749 = vmatpush.msra.mxu2 %v724_v36 }
0x12ba   :  { %750 = vmatpush.msra.mxu2 %v723_v39 }
0x12bc   :  { %751 = vmatpush.msra.mxu2 %v722_v41 }
0x12be   :  { %752 = vmatpush.msra.mxu2 %v721_v42 }
0x12ca   :  { %v57_v28 = vpop.f32.mrf.mxu0 }
0x12cb   :  { %v58_v29 = vadd.f32 %v912_v27, %v57_v28 }
0x12cd   :  { %v60_v30 = vmax.f32 %v58_v29, 0.0 }
0x12cf   :  { %v62_v31 = vrot.slane %v60_v30, 2 }
0x12d1   :  { %v64_v32 = vmax.f32 %v60_v30, %v62_v31 }
0x12d3   :  { %v66_v34 = vrot.slane %v64_v32, 4 }
0x12d5   :  { %v68_v35 = vmax.f32 %v64_v32, %v66_v34 }
0x12d7   :  { %898 = vmatmul.msk.f32.vlgmr.msrb.gmra.mxu3 %vm757_vm0, %v68_v35 }
0x1305   :  { %v706_v13 = vpop.permute.xlu2 %705 }
0x1306   :  { %v708_v14 = vmul.f32 %v706_v13, %v1137_v50 }
0x1308   :  { %710 = vrot.lane.b32.xlu2 %v708_v14, %s1001_s1 }
0x130d   :  { %v484_v33 = vpop.permute.xlu2 %483 }
0x130e   :  { %487 = vst.msk [vmem:[#allocation2] sm:$0x3] %vm486_vm13, %v484_v33 }
0x130f   :  { %562 = vst.msk [vmem:[#allocation2 - $0x2] sm:$0xc] %vm561_vm14, %v559_v15 }
0x1310   :  { %638 = vst.msk [vmem:[#allocation2 - $0x4] sm:$0x30] %vm637_vm15, %v635_v16 }
0x135a   :  { %v781_v49 = vpop.f32.mrf.mxu3 }
0x1362   :  { %v711_v43 = vpop.permute.xlu2 %710 }
0x1363   :  { %714 = vst.msk [vmem:[#allocation2 - $0x6] sm:$0xc0] %vm713_vm1, %v711_v43 }
0x136a   :  { %v720_v44 = vld [vmem:[#allocation2] sm:$0x3] }
0x136b   :  { %896 = vmatmul.msk.f32.vlgmr.msra.gmra.mxu2 %vm733_vm2, %v720_v44 }
0x13ee   :  { %v754_v50 = vpop.f32.mrf.mxu2 }
0x13ef   :  { %v782_v17 = vadd.f32 %v781_v49, %v754_v50 }
0x13f1   :  { %v786_v51 = vadd.f32 %v913_v48, %v782_v17 }
0x13f3   :  { %v787_v52 = vmax.f32 %v786_v51, 0.0 }
0x13f5   :  { %899 = vmatmul.msk.f32.vlgmr.msrb.gmra.mxu0 %vm793_vm3, %v787_v52 }
0x1472   :  { %v814_v54 = vpop.f32.mrf.mxu0 }
0x1473   :  { %v815_v7 = vadd.f32 %v914_v53, %v814_v54 }
0x1475   :  { %v818_v55 = vsel %vm817_vm4, %v815_v7, -inf }
0x1476   :  { %819 = vmax.xlane.f32.xlu0 %v818_v55 }
0x14e9   :  { %v820_v56 = vpop.xlane.xlu0 %819 }
0x14ea   :  { %v821_v38 = vsub.f32 %v815_v7, %v820_v56 }
0x14ec   :  { %v822_v18 = vmul.f32 1.442695, %v821_v38 }
0x14ee   :  { %963 = vpow2.f32 %v822_v18 }
0x14f4   :  { %v964_v57 = vpop.eup %963 }
0x14f5   :  { %v824_v58 = vsel %vm817_vm4, %v964_v57, 0.0 }
0x14f6   :  { %825 = vadd.xlane.f32.xlu1 %v824_v58 }
0x1569   :  { %v826_v59 = vpop.xlane.xlu1 %825 }
0x156a   :  { %965 = vrcp.f32 %v826_v59  ;;  %v838_v63 = vand.u32 2147483648, %v826_v59  ;;  %v836_v1 = vand.u32 2147483647, %v826_v59  ;;  %vm832_vm6 = vweird.f32 %v826_v59 }
0x156c   :  { %v839_v4 = vor.u32 1.1754944e-38, %v838_v63  ;;  %vm837_vm9 = vcmp.eq.f32.partialorder %v836_v1, 8.507059e+37 }
0x1570   :  { %v966_v60 = vpop.eup %965 }
0x1571   :  { %v828_v61 = vmul.f32 %v966_v60, %v826_v59  ;;  %vm833_vm5 = vweird.f32 %v966_v60 }
0x1572   :  { %vm834_vm7 = vmor %vm832_vm6, %vm833_vm5 }
0x1573   :  { %v829_v62 = vsub.f32 1.0, %v828_v61 }
0x1575   :  { %v830_v0 = vmul.f32 %v966_v60, %v829_v62 }
0x1577   :  { %v831_v3 = vadd.f32 %v966_v60, %v830_v0 }
0x1579   :  { %v835_v5 = vsel %vm834_vm7, %v966_v60, %v831_v3 }
0x157a   :  { %v840_v6 = vsel %vm837_vm9, %v839_v4, %v835_v5 }
0x157b   :  { %v841_v8 = vmul.f32 %v964_v57, %v840_v6 }
0x157d   :  { %842 = vst.msk [vmem:[#allocation3] sm:$0x3] %vm817_vm4, %v841_v8 }
0x157e   :  { %853 = dma.vmem_to_hbm [thread:$0]  %s849_s22, 32, %s851_s25, [#allocation4]  }
0x157f   :  { %991 = dma.done.wait [#allocation4], 32  }
0x1580   :  { %992 = vsyncadd [#allocation4], 4294967264 }
0x1581   :  { %858 = vsyncpa [#allocation4], 1 }

</bundles_post_ra>
